<compile_context>
chip_gen: v7x
topology: tpu7x:2x2x1
jax: 0.10.0
libtpu: 0.0.40
codegen_flags: <defaults>
</compile_context>

<pallas_src>
import math
import functools

import jax
import jax.numpy as jnp
from jax.experimental import pallas as pl
from jax.experimental.pallas import tpu as pltpu


# Set to jnp.bfloat16 on v6e/v7x for ~2x MXU throughput (relax the check
# tolerance to ~1e-2).  Kept f32 here so the numerical check below stays tight.
MATMUL_DTYPE = jnp.float32


def _mm(a, b):
    """MXU matmul with f32 accumulation; operands optionally cast to bf16."""
    return jnp.dot(a.astype(MATMUL_DTYPE), b.astype(MATMUL_DTYPE),
                   preferred_element_type=jnp.float32)


def _round_up(x, m):
    return ((x + m - 1) // m) * m


# ----------------------------------------------------------------------------
# Kernel 1: fc -> single-head self-attention -> out_proj, fused with the three
# post-attention projections (pair-MLP layer-1 split into its h[j]/h[i] halves
# + fc_node), packed into one lane-dense (tq, 128k) output slab.
# ----------------------------------------------------------------------------
def _attn_proj_kernel(hq_ref, hkv_ref, wfc_ref, bfc_ref,
                      wq_ref, bq_ref, wk_ref, bk_ref, wv_ref, bv_ref,
                      wo_ref, bo_ref, wpost_ref, bpost_ref,
                      out_ref, *, scale):
    # fc on the query tile and (re)computed on all rows for K/V
    xq = _mm(hq_ref[...], wfc_ref[...]) + bfc_ref[...]
    xkv = _mm(hkv_ref[...], wfc_ref[...]) + bfc_ref[...]
    # in-projections (single head => head_dim == hidden)
    q = _mm(xq, wq_ref[...]) + bq_ref[...]
    k = _mm(xkv, wk_ref[...]) + bk_ref[...]
    v = _mm(xkv, wv_ref[...]) + bv_ref[...]
    # softmax kept in f32 (v5e has no bf16 VPU/EUP)
    s = _mm(q, k.T) * scale
    m = jnp.max(s, axis=-1, keepdims=True)
    p = jnp.exp(s - m)
    probs = p / jnp.sum(p, axis=-1, keepdims=True)
    ctx = _mm(probs, v)
    h_attn = _mm(ctx, wo_ref[...]) + bo_ref[...]
    # one wide lane-dense matmul produces [A | B | node | pad]
    out_ref[...] = _mm(h_attn, wpost_ref[...]) + bpost_ref[...]


def _pick_q_tile(n, target=256):
    divs8 = [d for d in range(8, n, 8) if n % d == 0 and d <= target]
    return max(divs8) if divs8 else n


def fused_attention_projections(h, w_fc, b_fc, w_q, b_q, w_k, b_k, w_v, b_v,
                                w_o, b_o, w_post, b_post):
    n, fin = h.shape
    hidden = w_fc.shape[1]
    pw = w_post.shape[1]
    tq = _pick_q_tile(n)
    scale = 1.0 / math.sqrt(hidden)
    kern = functools.partial(_attn_proj_kernel, scale=scale)

    def full(a):
        return pl.BlockSpec(a.shape, lambda i: (0,) * a.ndim)

    return pl.pallas_call(
        kern,
        out_shape=jax.ShapeDtypeStruct((n, pw), jnp.float32),
        grid=(n // tq,),
        in_specs=[
            pl.BlockSpec((tq, fin), lambda i: (i, 0)),   # query-row tile
            pl.BlockSpec((n, fin), lambda i: (0, 0)),    # full rows for K/V
            full(w_fc), full(b_fc),
            full(w_q), full(b_q), full(w_k), full(b_k), full(w_v), full(b_v),
            full(w_o), full(b_o), full(w_post), full(b_post),
        ],
        out_specs=pl.BlockSpec((tq, pw), lambda i: (i, 0)),
        compiler_params=pltpu.CompilerParams(dimension_semantics=("parallel",)),
    )(h, h, w_fc, b_fc, w_q, b_q, w_k, b_k, w_v, b_v, w_o, b_o, w_post, b_post)


# ----------------------------------------------------------------------------
# Kernel 2: pair MLP second layer.  h_interaction is never materialized:
# tanh(A[j] + B[i]) is formed in-register per tile and only the second matmul
# runs per pair row.  Output width padded to a multiple of 128 lanes.
# ----------------------------------------------------------------------------
def _pair_kernel(a_ref, b_ref, w2_ref, b2_ref, out_ref):
    a = a_ref[...]            # (n, H)   -- includes b_i1
    b = b_ref[...]            # (ti, H)
    ti, hid = b.shape
    n = a.shape[0]
    x = jnp.tanh(b[:, None, :] + a[None, :, :])        # (ti, n, H), f32 tanh
    x2 = x.reshape(ti * n, hid)                        # collapse leading dims
    out_ref[...] = _mm(x2, w2_ref[...]) + b2_ref[...]


def _pick_row_tile(n, target_pair_rows=512):
    # rows per grid step = ti * n; ti must divide n and satisfy the sublane
    # constraint (multiple of 8, or ti == n).
    divs8 = [d for d in range(8, n, 8) if n % d == 0]
    if not divs8:
        return n
    fitting = [d for d in divs8 if d * n <= target_pair_rows]
    return max(fitting) if fitting else min(divs8)
    # TODO(synk): for very large n also tile the j axis so (ti*n, H) stays bounded.


def pair_mlp(a, b, w2, b2):
    n, hidden = a.shape
    o = w2.shape[1]
    ti = _pick_row_tile(n)

    def full(arr):
        return pl.BlockSpec(arr.shape, lambda i: (0,) * arr.ndim)

    return pl.pallas_call(
        _pair_kernel,
        out_shape=jax.ShapeDtypeStruct((n * n, o), jnp.float32),
        grid=(n // ti,),
        in_specs=[
            pl.BlockSpec((n, hidden), lambda i: (0, 0)),   # A stays resident
            pl.BlockSpec((ti, hidden), lambda i: (i, 0)),  # B row tile
            full(w2), full(b2),
        ],
        out_specs=pl.BlockSpec((ti * n, o), lambda i: (i, 0)),
        compiler_params=pltpu.CompilerParams(dimension_semantics=("parallel",)),
    )(a, b, w2, b2)


# ----------------------------------------------------------------------------
# ParameterGeneration forward (packing / reshapes in plain JAX, hot paths in
# two Pallas kernels)
# ----------------------------------------------------------------------------
def parameter_generation_forward(h, p, *, num_rbf, num_basis):
    n = h.shape[0]
    H = p["w_fc"].shape[1]
    node_w = num_basis * num_basis + 2 * num_basis

    # split packed qkv (stored (in, out)) into per-projection pieces
    w_q, w_k, w_v = (p["w_qkv"][:, :H], p["w_qkv"][:, H:2 * H],
                     p["w_qkv"][:, 2 * H:])
    b_q, b_k, b_v = (p["b_qkv"][:, :H], p["b_qkv"][:, H:2 * H],
                     p["b_qkv"][:, 2 * H:])

    # pack post-attention projections into one lane-dense (H, P) matmul:
    #   cols [0:H)      -> A = h_attn @ W_i1[:H] + b_i1
    #   cols [H:2H)     -> B = h_attn @ W_i1[H:]
    #   cols [2H:2H+nw) -> fc_node
    cols = 2 * H + node_w
    P = _round_up(cols, 128)
    w_post = jnp.zeros((H, P), jnp.float32)
    w_post = w_post.at[:, :H].set(p["w_i1"][:H])
    w_post = w_post.at[:, H:2 * H].set(p["w_i1"][H:])
    w_post = w_post.at[:, 2 * H:cols].set(p["w_node"])
    b_post = jnp.zeros((1, P), jnp.float32)
    b_post = b_post.at[:, :H].set(p["b_i1"])
    b_post = b_post.at[:, 2 * H:cols].set(p["b_node"])

    slab = fused_attention_projections(h, p["w_fc"], p["b_fc"], w_q, b_q,
                                       w_k, b_k, w_v, b_v, p["w_o"], p["b_o"],
                                       w_post, b_post)
    A = slab[:, :H]
    B = slab[:, H:2 * H]
    node = slab[:, 2 * H:cols]

    # pair MLP second layer, output padded to 128-lane multiple
    out_w = 2 * num_rbf * num_basis
    O = _round_up(out_w, 128)
    w_i2p = jnp.zeros((H, O), jnp.float32).at[:, :out_w].set(p["w_i2"])
    b_i2p = jnp.zeros((1, O), jnp.float32).at[:, :out_w].set(p["b_i2"])
    kq = pair_mlp(A, B, w_i2p, b_i2p)[:, :out_w]          # (n*n, out_w)

    RB = num_rbf * num_basis
    K = kq[:, :RB].reshape(n, n, num_rbf, num_basis)
    Q = kq[:, RB:].reshape(n, n, num_rbf, num_basis)
    BB = num_basis * num_basis
    W0 = node[:, :BB].reshape(n, num_basis, num_basis)
    B0 = node[:, BB:BB + num_basis]
    W1 = node[:, BB + num_basis:].reshape(n, num_basis, 1)
    return K, Q, W0, B0, W1


# ----------------------------------------------------------------------------
# Deterministic parameter initialization (mimics torch.nn.Linear uniform init)
# ----------------------------------------------------------------------------
def init_params(key, in_features, hidden, num_rbf, num_basis):
    def lin(k, fin, fout):
        kw, kb = jax.random.split(k)
        s = 1.0 / math.sqrt(fin)
        w = jax.random.uniform(kw, (fin, fout), jnp.float32, -s, s)
        b = jax.random.uniform(kb, (1, fout), jnp.float32, -s, s)
        return w, b

    ks = jax.random.split(key, 6)
    w_fc, b_fc = lin(ks[0], in_features, hidden)
    w_qkv, b_qkv = lin(ks[1], hidden, 3 * hidden)              # packed in_proj
    w_o, b_o = lin(ks[2], hidden, hidden)                      # attn out_proj
    w_i1, b_i1 = lin(ks[3], 2 * hidden, hidden)                # fc_interaction[0]
    w_i2, b_i2 = lin(ks[4], hidden, 2 * num_rbf * num_basis)   # fc_interaction[2]
    w_node, b_node = lin(ks[5], hidden,
                         num_basis * num_basis + 2 * num_basis)
    return dict(w_fc=w_fc, b_fc=b_fc, w_qkv=w_qkv, b_qkv=b_qkv, w_o=w_o,
                b_o=b_o, w_i1=w_i1, b_i1=b_i1, w_i2=w_i2, b_i2=b_i2,
                w_node=w_node, b_node=b_node)


# ----------------------------------------------------------------------------
# Pure-JAX reference for numerical verification
# ----------------------------------------------------------------------------
def reference_forward(h, p, *, num_rbf, num_basis):
    x = h @ p["w_fc"] + p["b_fc"]
    qkv = x @ p["w_qkv"] + p["b_qkv"]
    H = x.shape[1]
    q, k, v = qkv[:, :H], qkv[:, H:2 * H], qkv[:, 2 * H:]
    s = (q @ k.T) / math.sqrt(H)
    pr = jax.nn.softmax(s, axis=-1)
    ha = (pr @ v) @ p["w_o"] + p["b_o"]
    n = ha.shape[0]
    hj = jnp.broadcast_to(ha[None, :, :], (n, n, H))
    hi = jnp.broadcast_to(ha[:, None, :], (n, n, H))
    hint = jnp.concatenate([hj, hi], axis=-1)
    kq = jnp.tanh(hint @ p["w_i1"] + p["b_i1"]) @ p["w_i2"] + p["b_i2"]
    RB = num_rbf * num_basis
    K = kq[..., :RB].reshape(n, n, num_rbf, num_basis)
    Q = kq[..., RB:].reshape(n, n, num_rbf, num_basis)
    node = ha @ p["w_node"] + p["b_node"]
    BB = num_basis * num_basis
    W0 = node[:, :BB].reshape(n, num_basis, num_basis)
    B0 = node[:, BB:BB + num_basis]
    W1 = node[:, BB + num_basis:].reshape(n, num_basis, 1)
    return K, Q, W0, B0, W1


if __name__ == "__main__":
    in_features = 8
    hidden_features = 32
    num_basis = 4
    num_rbf = 16        # constructor arg (default NUM_RBF=100); kept small here
    n_nodes = 8

    key = jax.random.PRNGKey(0)
    k_in, k_par = jax.random.split(key)
    h = jax.random.normal(k_in, (n_nodes, in_features), jnp.float32)
    params = init_params(k_par, in_features, hidden_features, num_rbf, num_basis)

    outs = parameter_generation_forward(h, params,
                                        num_rbf=num_rbf, num_basis=num_basis)
    outs = jax.block_until_ready(outs)

    refs = reference_forward(h, params, num_rbf=num_rbf, num_basis=num_basis)
    names = ("K", "Q", "W0", "B0", "W1")
    expected_shapes = {
        "K": (n_nodes, n_nodes, num_rbf, num_basis),
        "Q": (n_nodes, n_nodes, num_rbf, num_basis),
        "W0": (n_nodes, num_basis, num_basis),
        "B0": (n_nodes, num_basis),
        "W1": (n_nodes, num_basis, 1),
    }
    for name, o, r in zip(names, outs, refs):
        assert o.shape == expected_shapes[name], (name, o.shape)
        assert jnp.allclose(o, r, atol=1e-4, rtol=1e-4), name

    print("KERNEL_OK")
</pallas_src>

<mosaic_0001>
module attributes {stable_mosaic.version = 11 : i64} {
  func.func @_attn_proj_kernel(%arg0: i32, %arg1: memref<8x8xf32, #tpu.memory_space<vmem>>, %arg2: memref<8x8xf32, #tpu.memory_space<vmem>>, %arg3: memref<8x32xf32, #tpu.memory_space<vmem>>, %arg4: memref<1x32xf32, #tpu.memory_space<vmem>>, %arg5: memref<32x32xf32, #tpu.memory_space<vmem>>, %arg6: memref<1x32xf32, #tpu.memory_space<vmem>>, %arg7: memref<32x32xf32, #tpu.memory_space<vmem>>, %arg8: memref<1x32xf32, #tpu.memory_space<vmem>>, %arg9: memref<32x32xf32, #tpu.memory_space<vmem>>, %arg10: memref<1x32xf32, #tpu.memory_space<vmem>>, %arg11: memref<32x32xf32, #tpu.memory_space<vmem>>, %arg12: memref<1x32xf32, #tpu.memory_space<vmem>>, %arg13: memref<32x128xf32, #tpu.memory_space<vmem>>, %arg14: memref<1x128xf32, #tpu.memory_space<vmem>>, %arg15: memref<8x128xf32, #tpu.memory_space<vmem>>) attributes {dimension_semantics = [#tpu.dimension_semantics<parallel>], iteration_bounds = array<i64: 1>, scalar_prefetch = 0 : i64, scratch_operands = 0 : i64, tpu.core_type = #tpu.core_type<tc>, window_params = [{transform_indices = @transform_0, window_bounds = array<i64: 8, 8>}, {pipeline_mode = #tpu.pipeline_mode<synchronous>, transform_indices = @transform_1, window_bounds = array<i64: 8, 8>}, {pipeline_mode = #tpu.pipeline_mode<synchronous>, transform_indices = @transform_2, window_bounds = array<i64: 8, 32>}, {pipeline_mode = #tpu.pipeline_mode<synchronous>, transform_indices = @transform_3, window_bounds = array<i64: 1, 32>}, {pipeline_mode = #tpu.pipeline_mode<synchronous>, transform_indices = @transform_4, window_bounds = array<i64: 32, 32>}, {pipeline_mode = #tpu.pipeline_mode<synchronous>, transform_indices = @transform_5, window_bounds = array<i64: 1, 32>}, {pipeline_mode = #tpu.pipeline_mode<synchronous>, transform_indices = @transform_6, window_bounds = array<i64: 32, 32>}, {pipeline_mode = #tpu.pipeline_mode<synchronous>, transform_indices = @transform_7, window_bounds = array<i64: 1, 32>}, {pipeline_mode = #tpu.pipeline_mode<synchronous>, transform_indices = @transform_8, window_bounds = array<i64: 32, 32>}, {pipeline_mode = #tpu.pipeline_mode<synchronous>, transform_indices = @transform_9, window_bounds = array<i64: 1, 32>}, {pipeline_mode = #tpu.pipeline_mode<synchronous>, transform_indices = @transform_10, window_bounds = array<i64: 32, 32>}, {pipeline_mode = #tpu.pipeline_mode<synchronous>, transform_indices = @transform_11, window_bounds = array<i64: 1, 32>}, {pipeline_mode = #tpu.pipeline_mode<synchronous>, transform_indices = @transform_12, window_bounds = array<i64: 32, 128>}, {pipeline_mode = #tpu.pipeline_mode<synchronous>, transform_indices = @transform_13, window_bounds = array<i64: 1, 128>}, {transform_indices = @transform_14, window_bounds = array<i64: 8, 128>}]} {
    %c0 = arith.constant 0 : index
    %c0_0 = arith.constant 0 : index
    %0 = vector.load %arg1[%c0, %c0_0] : memref<8x8xf32, #tpu.memory_space<vmem>>, vector<8x8xf32>
    %c0_1 = arith.constant 0 : index
    %c0_2 = arith.constant 0 : index
    %1 = vector.load %arg3[%c0_1, %c0_2] : memref<8x32xf32, #tpu.memory_space<vmem>>, vector<8x32xf32>
    %cst = arith.constant dense<0.000000e+00> : vector<8x32xf32>
    %2 = tpu.matmul %0, %1, %cst {dimension_numbers = #tpu.dot_dimension_numbers<[1], [0], [0], [1], [0, 0, 1, 1], [], []>} : vector<8x8xf32>, vector<8x32xf32>, vector<8x32xf32> -> vector<8x32xf32>
    %c0_3 = arith.constant 0 : index
    %c0_4 = arith.constant 0 : index
    %3 = vector.load %arg4[%c0_3, %c0_4] : memref<1x32xf32, #tpu.memory_space<vmem>>, vector<1x32xf32>
    %4 = vector.broadcast %3 : vector<1x32xf32> to vector<8x32xf32>
    %5 = arith.addf %2, %4 : vector<8x32xf32>
    %c0_5 = arith.constant 0 : index
    %c0_6 = arith.constant 0 : index
    %6 = vector.load %arg2[%c0_5, %c0_6] : memref<8x8xf32, #tpu.memory_space<vmem>>, vector<8x8xf32>
    %c0_7 = arith.constant 0 : index
    %c0_8 = arith.constant 0 : index
    %7 = vector.load %arg3[%c0_7, %c0_8] : memref<8x32xf32, #tpu.memory_space<vmem>>, vector<8x32xf32>
    %cst_9 = arith.constant dense<0.000000e+00> : vector<8x32xf32>
    %8 = tpu.matmul %6, %7, %cst_9 {dimension_numbers = #tpu.dot_dimension_numbers<[1], [0], [0], [1], [0, 0, 1, 1], [], []>} : vector<8x8xf32>, vector<8x32xf32>, vector<8x32xf32> -> vector<8x32xf32>
    %c0_10 = arith.constant 0 : index
    %c0_11 = arith.constant 0 : index
    %9 = vector.load %arg4[%c0_10, %c0_11] : memref<1x32xf32, #tpu.memory_space<vmem>>, vector<1x32xf32>
    %10 = vector.broadcast %9 : vector<1x32xf32> to vector<8x32xf32>
    %11 = arith.addf %8, %10 : vector<8x32xf32>
    %c0_12 = arith.constant 0 : index
    %c0_13 = arith.constant 0 : index
    %12 = vector.load %arg5[%c0_12, %c0_13] : memref<32x32xf32, #tpu.memory_space<vmem>>, vector<32x32xf32>
    %cst_14 = arith.constant dense<0.000000e+00> : vector<8x32xf32>
    %13 = tpu.matmul %5, %12, %cst_14 {dimension_numbers = #tpu.dot_dimension_numbers<[1], [0], [0], [1], [0, 0, 1, 1], [], []>} : vector<8x32xf32>, vector<32x32xf32>, vector<8x32xf32> -> vector<8x32xf32>
    %c0_15 = arith.constant 0 : index
    %c0_16 = arith.constant 0 : index
    %14 = vector.load %arg6[%c0_15, %c0_16] : memref<1x32xf32, #tpu.memory_space<vmem>>, vector<1x32xf32>
    %15 = vector.broadcast %14 : vector<1x32xf32> to vector<8x32xf32>
    %16 = arith.addf %13, %15 : vector<8x32xf32>
    %c0_17 = arith.constant 0 : index
    %c0_18 = arith.constant 0 : index
    %17 = vector.load %arg7[%c0_17, %c0_18] : memref<32x32xf32, #tpu.memory_space<vmem>>, vector<32x32xf32>
    %cst_19 = arith.constant dense<0.000000e+00> : vector<8x32xf32>
    %18 = tpu.matmul %11, %17, %cst_19 {dimension_numbers = #tpu.dot_dimension_numbers<[1], [0], [0], [1], [0, 0, 1, 1], [], []>} : vector<8x32xf32>, vector<32x32xf32>, vector<8x32xf32> -> vector<8x32xf32>
    %c0_20 = arith.constant 0 : index
    %c0_21 = arith.constant 0 : index
    %19 = vector.load %arg8[%c0_20, %c0_21] : memref<1x32xf32, #tpu.memory_space<vmem>>, vector<1x32xf32>
    %20 = vector.broadcast %19 : vector<1x32xf32> to vector<8x32xf32>
    %21 = arith.addf %18, %20 : vector<8x32xf32>
    %c0_22 = arith.constant 0 : index
    %c0_23 = arith.constant 0 : index
    %22 = vector.load %arg9[%c0_22, %c0_23] : memref<32x32xf32, #tpu.memory_space<vmem>>, vector<32x32xf32>
    %cst_24 = arith.constant dense<0.000000e+00> : vector<8x32xf32>
    %23 = tpu.matmul %11, %22, %cst_24 {dimension_numbers = #tpu.dot_dimension_numbers<[1], [0], [0], [1], [0, 0, 1, 1], [], []>} : vector<8x32xf32>, vector<32x32xf32>, vector<8x32xf32> -> vector<8x32xf32>
    %c0_25 = arith.constant 0 : index
    %c0_26 = arith.constant 0 : index
    %24 = vector.load %arg10[%c0_25, %c0_26] : memref<1x32xf32, #tpu.memory_space<vmem>>, vector<1x32xf32>
    %25 = vector.broadcast %24 : vector<1x32xf32> to vector<8x32xf32>
    %26 = arith.addf %23, %25 : vector<8x32xf32>
    %27 = tpu.transpose %21, [1, 0] : vector<8x32xf32> -> vector<32x8xf32>
    %cst_27 = arith.constant dense<0.000000e+00> : vector<8x8xf32>
    %28 = tpu.matmul %16, %27, %cst_27 {dimension_numbers = #tpu.dot_dimension_numbers<[1], [0], [0], [1], [0, 0, 1, 1], [], []>} : vector<8x32xf32>, vector<32x8xf32>, vector<8x8xf32> -> vector<8x8xf32>
    %cst_28 = arith.constant 0.176776692 : f32
    %29 = vector.broadcast %cst_28 : f32 to vector<8x8xf32>
    %30 = arith.mulf %28, %29 : vector<8x8xf32>
    %cst_29 = arith.constant dense<0xFF800000> : vector<8xf32>
    %31 = vector.multi_reduction <maximumf>, %30, %cst_29 [1] : vector<8x8xf32> to vector<8xf32>
    %32 = vector.shape_cast %31 : vector<8xf32> to vector<8x1xf32>
    %33 = vector.broadcast %32 : vector<8x1xf32> to vector<8x8xf32>
    %34 = arith.subf %30, %33 : vector<8x8xf32>
    %35 = math.exp %34 : vector<8x8xf32>
    %cst_30 = arith.constant dense<0.000000e+00> : vector<8xf32>
    %36 = vector.multi_reduction <add>, %35, %cst_30 [1] : vector<8x8xf32> to vector<8xf32>
    %37 = vector.shape_cast %36 : vector<8xf32> to vector<8x1xf32>
    %38 = vector.broadcast %37 : vector<8x1xf32> to vector<8x8xf32>
    %39 = arith.divf %35, %38 : vector<8x8xf32>
    %cst_31 = arith.constant dense<0.000000e+00> : vector<8x32xf32>
    %40 = tpu.matmul %39, %26, %cst_31 {dimension_numbers = #tpu.dot_dimension_numbers<[1], [0], [0], [1], [0, 0, 1, 1], [], []>} : vector<8x8xf32>, vector<8x32xf32>, vector<8x32xf32> -> vector<8x32xf32>
    %c0_32 = arith.constant 0 : index
    %c0_33 = arith.constant 0 : index
    %41 = vector.load %arg11[%c0_32, %c0_33] : memref<32x32xf32, #tpu.memory_space<vmem>>, vector<32x32xf32>
    %cst_34 = arith.constant dense<0.000000e+00> : vector<8x32xf32>
    %42 = tpu.matmul %40, %41, %cst_34 {dimension_numbers = #tpu.dot_dimension_numbers<[1], [0], [0], [1], [0, 0, 1, 1], [], []>} : vector<8x32xf32>, vector<32x32xf32>, vector<8x32xf32> -> vector<8x32xf32>
    %c0_35 = arith.constant 0 : index
    %c0_36 = arith.constant 0 : index
    %43 = vector.load %arg12[%c0_35, %c0_36] : memref<1x32xf32, #tpu.memory_space<vmem>>, vector<1x32xf32>
    %44 = vector.broadcast %43 : vector<1x32xf32> to vector<8x32xf32>
    %45 = arith.addf %42, %44 : vector<8x32xf32>
    %c0_37 = arith.constant 0 : index
    %c0_38 = arith.constant 0 : index
    %46 = vector.load %arg13[%c0_37, %c0_38] : memref<32x128xf32, #tpu.memory_space<vmem>>, vector<32x128xf32>
    %cst_39 = arith.constant dense<0.000000e+00> : vector<8x128xf32>
    %47 = tpu.matmul %45, %46, %cst_39 {dimension_numbers = #tpu.dot_dimension_numbers<[1], [0], [0], [1], [0, 0, 1, 1], [], []>} : vector<8x32xf32>, vector<32x128xf32>, vector<8x128xf32> -> vector<8x128xf32>
    %c0_40 = arith.constant 0 : index
    %c0_41 = arith.constant 0 : index
    %48 = vector.load %arg14[%c0_40, %c0_41] : memref<1x128xf32, #tpu.memory_space<vmem>>, vector<1x128xf32>
    %49 = vector.broadcast %48 : vector<1x128xf32> to vector<8x128xf32>
    %50 = arith.addf %47, %49 : vector<8x128xf32>
    %c0_42 = arith.constant 0 : index
    %c0_43 = arith.constant 0 : index
    %51 = vector.load %arg15[%c0_42, %c0_43] : memref<8x128xf32, #tpu.memory_space<vmem>>, vector<8x128xf32>
    tpu.vector_store %arg15[%c0_42, %c0_43], %50 {strides = array<i32>} : memref<8x128xf32, #tpu.memory_space<vmem>>, vector<8x128xf32>,
    return
  }
  func.func @transform_0(%arg0: i32) -> (i32, i32) {
    %c0_i32 = arith.constant 0 : i32
    %c0_i32_0 = arith.constant 0 : i32
    return %arg0, %c0_i32 : i32, i32
  }
  func.func @transform_1(%arg0: i32) -> (i32, i32) {
    %c0_i32 = arith.constant 0 : i32
    %c0_i32_0 = arith.constant 0 : i32
    %c0_i32_1 = arith.constant 0 : i32
    return %c0_i32, %c0_i32_0 : i32, i32
  }
  func.func @transform_2(%arg0: i32) -> (i32, i32) {
    %c0_i32 = arith.constant 0 : i32
    %c0_i32_0 = arith.constant 0 : i32
    %c0_i32_1 = arith.constant 0 : i32
    return %c0_i32, %c0_i32_0 : i32, i32
  }
  func.func @transform_3(%arg0: i32) -> (i32, i32) {
    %c0_i32 = arith.constant 0 : i32
    %c0_i32_0 = arith.constant 0 : i32
    %c0_i32_1 = arith.constant 0 : i32
    return %c0_i32, %c0_i32_0 : i32, i32
  }
  func.func @transform_4(%arg0: i32) -> (i32, i32) {
    %c0_i32 = arith.constant 0 : i32
    %c0_i32_0 = arith.constant 0 : i32
    %c0_i32_1 = arith.constant 0 : i32
    return %c0_i32, %c0_i32_0 : i32, i32
  }
  func.func @transform_5(%arg0: i32) -> (i32, i32) {
    %c0_i32 = arith.constant 0 : i32
    %c0_i32_0 = arith.constant 0 : i32
    %c0_i32_1 = arith.constant 0 : i32
    return %c0_i32, %c0_i32_0 : i32, i32
  }
  func.func @transform_6(%arg0: i32) -> (i32, i32) {
    %c0_i32 = arith.constant 0 : i32
    %c0_i32_0 = arith.constant 0 : i32
    %c0_i32_1 = arith.constant 0 : i32
    return %c0_i32, %c0_i32_0 : i32, i32
  }
  func.func @transform_7(%arg0: i32) -> (i32, i32) {
    %c0_i32 = arith.constant 0 : i32
    %c0_i32_0 = arith.constant 0 : i32
    %c0_i32_1 = arith.constant 0 : i32
    return %c0_i32, %c0_i32_0 : i32, i32
  }
  func.func @transform_8(%arg0: i32) -> (i32, i32) {
    %c0_i32 = arith.constant 0 : i32
    %c0_i32_0 = arith.constant 0 : i32
    %c0_i32_1 = arith.constant 0 : i32
    return %c0_i32, %c0_i32_0 : i32, i32
  }
  func.func @transform_9(%arg0: i32) -> (i32, i32) {
    %c0_i32 = arith.constant 0 : i32
    %c0_i32_0 = arith.constant 0 : i32
    %c0_i32_1 = arith.constant 0 : i32
    return %c0_i32, %c0_i32_0 : i32, i32
  }
  func.func @transform_10(%arg0: i32) -> (i32, i32) {
    %c0_i32 = arith.constant 0 : i32
    %c0_i32_0 = arith.constant 0 : i32
    %c0_i32_1 = arith.constant 0 : i32
    return %c0_i32, %c0_i32_0 : i32, i32
  }
  func.func @transform_11(%arg0: i32) -> (i32, i32) {
    %c0_i32 = arith.constant 0 : i32
    %c0_i32_0 = arith.constant 0 : i32
    %c0_i32_1 = arith.constant 0 : i32
    return %c0_i32, %c0_i32_0 : i32, i32
  }
  func.func @transform_12(%arg0: i32) -> (i32, i32) {
    %c0_i32 = arith.constant 0 : i32
    %c0_i32_0 = arith.constant 0 : i32
    %c0_i32_1 = arith.constant 0 : i32
    return %c0_i32, %c0_i32_0 : i32, i32
  }
  func.func @transform_13(%arg0: i32) -> (i32, i32) {
    %c0_i32 = arith.constant 0 : i32
    %c0_i32_0 = arith.constant 0 : i32
    %c0_i32_1 = arith.constant 0 : i32
    return %c0_i32, %c0_i32_0 : i32, i32
  }
  func.func @transform_14(%arg0: i32) -> (i32, i32) {
    %c0_i32 = arith.constant 0 : i32
    %c0_i32_0 = arith.constant 0 : i32
    return %arg0, %c0_i32 : i32, i32
  }
}

</mosaic_0001>

<bundles_post_ra>
// kernel: tpu_custom_call.1
= control target key start
LH: loop header
LB: loop body
LE: loop exit
PB: predicated region body
PF: predicated region fallthrough
CT: control target
= control target key end

     0   :  { %19 = vsyncpa [#allocation3], 0  ;;  %s1533_s0 = inlined_call_operand.hbm [shape: f32[8,8], index: 0, kind: input, shape index: {}]   ;;  %s1534_s1 = inlined_call_operand.hbm [shape: f32[8,8], index: 1, kind: input, shape index: {}]   ;;  %s1535_s2 = inlined_call_operand.hbm [shape: f32[8,32], index: 2, kind: input, shape index: {}]   ;;  %s1536_s3 = inlined_call_operand.vmem [shape: f32[1,32], index: 3, kind: input, shape index: {}]   ;;  %s1537_s4 = inlined_call_operand.hbm [shape: f32[32,32], index: 4, kind: input, shape index: {}]   ;;  %s1538_s5 = inlined_call_operand.vmem [shape: f32[1,32], index: 5, kind: input, shape index: {}]   ;;  %s1539_s6 = inlined_call_operand.hbm [shape: f32[32,32], index: 6, kind: input, shape index: {}]   ;;  %s1540_s7 = inlined_call_operand.vmem [shape: f32[1,32], index: 7, kind: input, shape index: {}]   ;;  %s1541_s8 = inlined_call_operand.hbm [shape: f32[32,32], index: 8, kind: input, shape index: {}]   ;;  %s1542_s9 = inlined_call_operand.vmem [shape: f32[1,32], index: 9, kind: input, shape index: {}]   ;;  %s1543_s10 = inlined_call_operand.vmem [shape: f32[32,32], index: 10, kind: input, shape index: {}]   ;;  %s1544_s11 = inlined_call_operand.vmem [shape: f32[1,32], index: 11, kind: input, shape index: {}]   ;;  %s1545_s12 = inlined_call_operand.hbm [shape: f32[32,128], index: 12, kind: input, shape index: {}]   ;;  %s1546_s13 = inlined_call_operand.vmem [shape: f32[1,128], index: 13, kind: input, shape index: {}]   ;;  %s1547_s14 = inlined_call_operand.hbm [shape: f32[8,128], index: 14, kind: output, shape index: {}]  }
   0x1   :  { %20 = vsyncpa [#allocation6], 0 }
   0x2   :  { %21 = vsyncpa [#allocation9], 0 }
   0x3   :  { %22 = vsyncpa [#allocation12], 0 }
   0x4   :  { %23 = vsyncpa [#allocation4], 0  ;;  %s1249_s29 = smov [#allocation5]   ;;  %s1250_s15 = smov [#allocation8]  }
   0x5   :  { %s40_s30 = sshll.u32 %s1249_s29, 4  ;;  %s61_s16 = sshll.u32 %s1250_s15, 4  ;;  %s41_s30 = int_to_ptr.vmem [resolvable:$true] %s40_s30  ;;  %s1337_s16 = int_to_ptr.vmem [resolvable:$true] %s61_s16 }
   0x6   :  { %s1063_s19 = scalar_lea.hbm %s1534_s1, 128 }
   0x7   :  { %p1064_p0 = scmp.ne.s32.totalorder %s1534_s1, %s1063_s19  ;;  %p1067_p1 = scmp.lt.u32.totalorder %s1063_s19, %s1534_s1 }
   0x9   :  { %p1069_p2 = pnand %p1067_p1, %p1064_p0 }
   0xb   :  { %1072 = shalt.err (!%p1069_p2)
}
   0xc   :  { %s1073_s24 = scalar_lea.vmem %s41_s30, 128  ;;  %p1078_p4 = scmp.lt.s32.totalorder %s41_s30, %s41_s30 }
   0xd   :  { %p1074_p3 = scmp.ne.s32.totalorder %s41_s30, %s1073_s24  ;;  %p1079_p5 = scmp.lt.s32.totalorder %s1073_s24, %s1073_s24 }
   0xf   :  { %p1080_p6 = por %p1079_p5, %p1078_p4 }
  0x11   :  { %p1081_p7 = pnand %p1080_p6, %p1074_p3 }
  0x13   :  { %1084 = shalt.err (!%p1081_p7)
}
  0x14   :  { %43 = dma.hbm_to_vmem [thread:$0]  %s1534_s1, 128, %s41_s30, [#allocation6]  }
  0x15   :  { %s1085_s29 = scalar_lea.hbm %s1537_s4, 512 }
  0x16   :  { %p1086_p8 = scmp.ne.s32.totalorder %s1537_s4, %s1085_s29  ;;  %p1089_p9 = scmp.lt.u32.totalorder %s1085_s29, %s1537_s4 }
  0x18   :  { %p1091_p10 = pnand %p1089_p9, %p1086_p8 }
  0x1a   :  { %1094 = shalt.err (!%p1091_p10)
}
  0x1b   :  { %s1095_s20 = scalar_lea.vmem %s1337_s16, 512  ;;  %p1100_p12 = scmp.lt.s32.totalorder %s1337_s16, %s1337_s16 }
  0x1c   :  { %p1096_p11 = scmp.ne.s32.totalorder %s1337_s16, %s1095_s20  ;;  %p1101_p13 = scmp.lt.s32.totalorder %s1095_s20, %s1095_s20 }
  0x1e   :  { %p1102_p0 = por %p1101_p13, %p1100_p12 }
  0x20   :  { %p1103_p1 = pnand %p1102_p0, %p1096_p11 }
  0x22   :  { %1106 = shalt.err (!%p1103_p1)
}
  0x23   :  { %s1251_s1 = smov 128   ;;  %s1252_s30 = smov 8  }
  0x24   :  { %67 = dma.hbm_to_vmem [thread:$0]  %s1537_s4, 512, %s1337_s16, [#allocation9], %s1251_s1, %s1251_s1, %s1252_s30  }
  0x25   :  { %s1253_s23 = smov [#allocation11]   ;;  %s1254_s25 = smov [#allocation2]  }
  0x26   :  { %s89_s24 = sshll.u32 %s1253_s23, 4  ;;  %s30_s26 = sshll.u32 %s1254_s25, 4  ;;  %s90_s24 = int_to_ptr.vmem [resolvable:$true] %s89_s24  ;;  %s31_s26 = int_to_ptr.vmem [resolvable:$true] %s30_s26 }
  0x27   :  { %s1107_s29 = scalar_lea.hbm %s1541_s8, 512 }
  0x28   :  { %p1108_p2 = scmp.ne.s32.totalorder %s1541_s8, %s1107_s29  ;;  %p1111_p3 = scmp.lt.u32.totalorder %s1107_s29, %s1541_s8 }
  0x2a   :  { %p1113_p4 = pnand %p1111_p3, %p1108_p2 }
  0x2c   :  { %1116 = shalt.err (!%p1113_p4)
}
  0x2d   :  { %s1117_s4 = scalar_lea.vmem %s90_s24, 512  ;;  %p1122_p6 = scmp.lt.s32.totalorder %s90_s24, %s90_s24 }
  0x2e   :  { %p1118_p5 = scmp.ne.s32.totalorder %s90_s24, %s1117_s4  ;;  %p1123_p7 = scmp.lt.s32.totalorder %s1117_s4, %s1117_s4 }
  0x30   :  { %p1124_p8 = por %p1123_p7, %p1122_p6 }
  0x32   :  { %p1125_p9 = pnand %p1124_p8, %p1118_p5 }
  0x34   :  { %1128 = shalt.err (!%p1125_p9)
}
  0x35   :  { %95 = dma.hbm_to_vmem [thread:$0]  %s1541_s8, 512, %s90_s24, [#allocation12], %s1251_s1, %s1251_s1, %s1252_s30  }
  0x36   :  { %s1129_s23 = scalar_lea.hbm %s1533_s0, 128 }
  0x37   :  { %p1130_p10 = scmp.ne.s32.totalorder %s1533_s0, %s1129_s23  ;;  %p1133_p11 = scmp.lt.u32.totalorder %s1129_s23, %s1533_s0 }
  0x39   :  { %p1135_p12 = pnand %p1133_p11, %p1130_p10 }
  0x3b   :  { %1138 = shalt.err (!%p1135_p12)
}
  0x3c   :  { %s1139_s15 = scalar_lea.vmem %s31_s26, 128  ;;  %p1144_p0 = scmp.lt.s32.totalorder %s31_s26, %s31_s26 }
  0x3d   :  { %p1140_p13 = scmp.ne.s32.totalorder %s31_s26, %s1139_s15  ;;  %p1145_p1 = scmp.lt.s32.totalorder %s1139_s15, %s1139_s15 }
  0x3f   :  { %p1146_p2 = por %p1145_p1, %p1144_p0 }
  0x41   :  { %p1147_p3 = pnand %p1146_p2, %p1140_p13 }
  0x43   :  { %1150 = shalt.err (!%p1147_p3)
}
  0x44   :  { %33 = dma.hbm_to_vmem [thread:$0]  %s1533_s0, 128, %s31_s26, [#allocation3]  }
  0x45   :  { %s1255_s17 = smov [#allocation7]   ;;  %s1256_s19 = smov [#allocation10]  }
  0x46   :  { %s50_s18 = sshll.u32 %s1255_s17, 4  ;;  %s75_s4 = sshll.u32 %s1256_s19, 4  ;;  %s51_s18 = int_to_ptr.vmem [resolvable:$true] %s50_s18  ;;  %s1398_s4 = int_to_ptr.vmem [resolvable:$true] %s75_s4 }
  0x47   :  { %s1151_s21 = scalar_lea.hbm %s1535_s2, 128 }
  0x48   :  { %p1152_p4 = scmp.ne.s32.totalorder %s1535_s2, %s1151_s21  ;;  %p1155_p5 = scmp.lt.u32.totalorder %s1151_s21, %s1535_s2 }
  0x4a   :  { %p1157_p6 = pnand %p1155_p5, %p1152_p4 }
  0x4c   :  { %1160 = shalt.err (!%p1157_p6)
}
  0x4d   :  { %s1161_s0 = scalar_lea.vmem %s51_s18, 128  ;;  %p1166_p8 = scmp.lt.s32.totalorder %s51_s18, %s51_s18 }
  0x4e   :  { %p1162_p7 = scmp.ne.s32.totalorder %s51_s18, %s1161_s0  ;;  %p1167_p9 = scmp.lt.s32.totalorder %s1161_s0, %s1161_s0 }
  0x50   :  { %p1168_p10 = por %p1167_p9, %p1166_p8 }
  0x52   :  { %p1169_p11 = pnand %p1168_p10, %p1162_p7 }
  0x54   :  { %1172 = shalt.err (!%p1169_p11)
}
  0x55   :  { %53 = dma.hbm_to_vmem [thread:$0]  %s1535_s2, 128, %s51_s18, [#allocation6]  }
  0x56   :  { %s1173_s8 = scalar_lea.hbm %s1539_s6, 512 }
  0x57   :  { %p1174_p12 = scmp.ne.s32.totalorder %s1539_s6, %s1173_s8  ;;  %p1177_p13 = scmp.lt.u32.totalorder %s1173_s8, %s1539_s6 }
  0x59   :  { %p1179_p0 = pnand %p1177_p13, %p1174_p12 }
  0x5b   :  { %1182 = shalt.err (!%p1179_p0)
}
  0x5c   :  { %s1183_s20 = scalar_lea.vmem %s1398_s4, 512  ;;  %p1188_p2 = scmp.lt.s32.totalorder %s1398_s4, %s1398_s4 }
  0x5d   :  { %p1184_p1 = scmp.ne.s32.totalorder %s1398_s4, %s1183_s20  ;;  %p1189_p3 = scmp.lt.s32.totalorder %s1183_s20, %s1183_s20 }
  0x5f   :  { %p1190_p4 = por %p1189_p3, %p1188_p2 }
  0x61   :  { %p1191_p5 = pnand %p1190_p4, %p1184_p1 }
  0x63   :  { %1194 = shalt.err (!%p1191_p5)
}
  0x64   :  { %81 = dma.hbm_to_vmem [thread:$0]  %s1539_s6, 512, %s1398_s4, [#allocation9], %s1251_s1, %s1251_s1, %s1252_s30  }
  0x65   :  { %s1257_s21 = smov [#allocation13]   ;;  %s1195_s27 = scalar_lea.hbm %s1545_s12, 512 }
  0x66   :  { %s107_s22 = sshll.u32 %s1257_s21, 4  ;;  %p1196_p6 = scmp.ne.s32.totalorder %s1545_s12, %s1195_s27  ;;  %s108_s22 = int_to_ptr.vmem [resolvable:$true] %s107_s22 }
  0x67   :  { %p1199_p7 = scmp.lt.u32.totalorder %s1195_s27, %s1545_s12 }
  0x69   :  { %p1201_p8 = pnand %p1199_p7, %p1196_p6 }
  0x6b   :  { %1204 = shalt.err (!%p1201_p8)
}
  0x6c   :  { %s1205_s15 = scalar_lea.vmem %s108_s22, 512  ;;  %p1210_p10 = scmp.lt.s32.totalorder %s108_s22, %s108_s22 }
  0x6d   :  { %p1206_p9 = scmp.ne.s32.totalorder %s108_s22, %s1205_s15  ;;  %p1211_p11 = scmp.lt.s32.totalorder %s1205_s15, %s1205_s15 }
  0x6f   :  { %p1212_p12 = por %p1211_p11, %p1210_p10 }
  0x71   :  { %p1213_p13 = pnand %p1212_p12, %p1206_p9 }
  0x73   :  { %1216 = shalt.err (!%p1213_p13)
}
  0x74   :  { %113 = dma.hbm_to_vmem [thread:$0]  %s1545_s12, 512, %s108_s22, [#allocation12], %s1251_s1, %s1251_s1, %s1252_s30  }
  0x75   :  { %1239 = dma.done.wait [#allocation3], 128  }
  0x76   :  { %1240 = vsyncadd [#allocation3], 4294967168 }
  0x77   :  { %1241 = dma.done.wait [#allocation6], 256  }
  0x78   :  { %1242 = vsyncadd [#allocation6], 4294967040 }
  0x79   :  { %1243 = dma.done.wait [#allocation9], 1024  }
  0x7a   :  { %1244 = vsyncadd [#allocation9], 4294966272 }
  0x7b   :  { %1245 = dma.done.wait [#allocation12], 1024  }
  0x7c   :  { %1246 = vsyncadd [#allocation12], 4294966272  ;;  %v1258_v0 = vmov 0.0   ;;  %vm1259_vm0 = vmmov 0   ;;  %vm146_vm1 = vcmask 64512   ;;  %v138_v1 = vld [vmem:[#allocation7] sm:$0xff] }
  0x7d   :  { %941 = vmatprep.subr.mxu0 %v1258_v0  ;;  %946 = vmatprep.subr.mxu1 %v1258_v0  ;;  %v137_v2 = vld [vmem:[#allocation2] sm:$0xff]  ;;  %v220_v3 = vld [vmem:[#allocation5] sm:$0xff]  ;;  %v294_v4 = vld [vmem:[#allocation8] sm:$0xff]  ;;  %v1260_v11 = vmov 0.0|0.0   ;;  %vm305_vm2 = vcmask 261120   ;;  %s1261_s27 = smov [#allocation14]  }
  0x7e   :  { %943 = vmatprep.mubr.msk.f32.mxu0 %vm1259_vm0, %v1258_v0  ;;  %948 = vmatprep.mubr.msk.f32.mxu1 %vm1259_vm0, %v1258_v0  ;;  %v295_v5 = vld [vmem:[#allocation8 + $0x8] sm:$0xff]  ;;  %v379_v6 = vld [vmem:[#allocation10] sm:$0xff]  ;;  %v296_v9 = vld [vmem:[#allocation8 + $0x10] sm:$0xff]  ;;  %s880_s0 = sshll.u32 %s1261_s27, 4  ;;  %s881_s0 = int_to_ptr.vmem [resolvable:$true] %s880_s0 }
  0x7f   :  { %942 = vmatpush3.msra.mxu0 %v138_v1  ;;  %947 = vmatpush3.msra.mxu1 %v138_v1  ;;  %v1017_v7 = vpack.c.bf16 %v295_v5, %v294_v4  ;;  %v380_v8 = vld [vmem:[#allocation10 + $0x8] sm:$0xff]  ;;  %v297_v10 = vld [vmem:[#allocation8 + $0x18] sm:$0xff]  ;;  %v381_v14 = vld [vmem:[#allocation10 + $0x10] sm:$0xff]  ;;  %s1217_s26 = scalar_lea.vmem %s881_s0, 128  ;;  %p1222_p1 = scmp.lt.s32.totalorder %s881_s0, %s881_s0 }
  0x80   :  { %944 = vmatmul.mubr.msk.f32.vlgmr.msra.gmra.mrb[0].mxu0 %vm146_vm1, %v137_v2  ;;  %949 = vmatmul.mubr.msk.f32.vlgmr.msra.gmra.mrb[0].mxu1 %vm146_vm1, %v220_v3  ;;  %v1023_v12 = vpack.c.bf16 %v380_v8, %v379_v6  ;;  %v1020_v13 = vpack.c.bf16 %v297_v10, %v296_v9  ;;  %v382_v15 = vld [vmem:[#allocation10 + $0x18] sm:$0xff]  ;;  %v463_v17 = vld [vmem:[#allocation11] sm:$0xff]  ;;  %v464_v18 = vld [vmem:[#allocation11 + $0x8] sm:$0xff]  ;;  %p1218_p0 = scmp.ne.s32.totalorder %s881_s0, %s1217_s26  ;;  %p1223_p2 = scmp.lt.s32.totalorder %s1217_s26, %s1217_s26 }
  0x81   :  { %1016 = vmatprep.subr.bf16.mxu0 %v1260_v11  ;;  %1022 = vmatprep.subr.bf16.mxu1 %v1260_v11  ;;  %v1026_v16 = vpack.c.bf16 %v382_v15, %v381_v14  ;;  %v892_v19 = vld [vmem:[%s1536_s3] ss:$0 sm:$0xff]  ;;  %v1029_v22 = vpack.c.bf16 %v464_v18, %v463_v17  ;;  %v465_v27 = vld [vmem:[#allocation11 + $0x10] sm:$0xff]  ;;  %v466_v28 = vld [vmem:[#allocation11 + $0x18] sm:$0xff] }
  0x82   :  { %1018 = vmatpush3.bf16.msra.mxu0 %v1017_v7  ;;  %959 = vmatprep.mubr.msk.f32.mxu0 %vm1259_vm0, %v1258_v0  ;;  %v1032_v29 = vpack.c.bf16 %v466_v28, %v465_v27  ;;  %v897_v30 = vld [vmem:[%s1540_s7] ss:$0 sm:$0xff]  ;;  %v706_v52 = vld [vmem:[%s1543_s10 + $0x8] sm:$0xff]  ;;  %v707_v53 = vld [vmem:[%s1543_s10 + $0x10] sm:$0xff]  ;;  %p1224_p3 = por %p1223_p2, %p1222_p1 }
  0x83   :  { %1024 = vmatpush3.bf16.msra.mxu1 %v1023_v12  ;;  %1019 = vmatprep.subr.bf16.mxu0 %v1260_v11  ;;  %v895_v31 = vld [vmem:[%s1538_s5] ss:$0 sm:$0xff]  ;;  %v708_v55 = vld [vmem:[%s1543_s10 + $0x18] sm:$0xff]  ;;  %v791_v2 = vld [vmem:[#allocation13 + $0x10] sm:$0xff] }
  0x84   :  { %1025 = vmatprep.subr.bf16.mxu1 %v1260_v11  ;;  %970 = vmatprep.mubr.msk.f32.mxu1 %vm1259_vm0, %v1258_v0  ;;  %v899_v38 = vld [vmem:[%s1542_s9] ss:$0 sm:$0xff]  ;;  %v1038_v56 = vpack.c.bf16 %v708_v55, %v707_v53  ;;  %v789_v60 = vld [vmem:[#allocation13] sm:$0xff]  ;;  %v792_v3 = vld [vmem:[#allocation13 + $0x18] sm:$0xff]  ;;  %p1225_p4 = pnand %p1224_p3, %p1218_p0 }
  0x85   :  { %v705_v51 = vld [vmem:[%s1543_s10] sm:$0xff]  ;;  %v1044_v4 = vpack.c.bf16 %v792_v3, %v791_v2 }
  0x86   :  { %1021 = vmatpush3.bf16.msra.mxu0 %v1020_v13  ;;  %v1035_v54 = vpack.c.bf16 %v706_v52, %v705_v51  ;;  %v790_v61 = vld [vmem:[#allocation13 + $0x8] sm:$0xff] }
  0x87   :  { %1028 = vmatprep.subr.bf16.mxu0 %v1260_v11  ;;  %1027 = vmatpush3.bf16.msra.mxu1 %v1026_v16  ;;  %v1041_v62 = vpack.c.bf16 %v790_v61, %v789_v60  ;;  %v904_v5 = vld [vmem:[%s1544_s11] ss:$0 sm:$0xff] }
  0x88   :  { %984 = vmatprep.subr.mxu1 %v1258_v0  ;;  %v906_v8 = vld [vmem:[%s1546_s13] ss:$0 sm:$0xff] }
 0x153   :  { %v216_v20 = vpop.f32.mrb[0].mxu0  ;;  %v290_v21 = vpop.f32.mrb[0].mxu1 }
 0x154   :  { %v217_v23 = vadd.f32 %v892_v19, %v216_v20  ;;  %v291_v24 = vadd.f32 %v892_v19, %v290_v21  ;;  %v950_v25 = vpop.f32.mrb[1].mxu1  ;;  %v945_v26 = vpop.f32.mrb[1].mxu0 }
 0x156   :  { %960 = vmatmul.mubr.msk.f32.vlgmr.msra.gmra.mrb[2].mxu0 %vm305_vm2, %v217_v23  ;;  %971 = vmatmul.mubr.msk.f32.vlgmr.msra.gmra.mrb[2].mxu1 %vm305_vm2, %v291_v24 }
 0x157   :  { %1030 = vmatpush3.bf16.msra.mxu0 %v1029_v22  ;;  %981 = vmatprep.mubr.msk.f32.mxu0 %vm1259_vm0, %v1258_v0 }
 0x158   :  { %1031 = vmatprep.subr.bf16.mxu0 %v1260_v11  ;;  %986 = vmatprep.mubr.msk.f32.mxu1 %vm1259_vm0, %v1258_v0 }
 0x15b   :  { %1033 = vmatpush3.bf16.msra.mxu0 %v1032_v29 }
 0x15c   :  { %1034 = vmatprep.subr.bf16.mxu0 %v1260_v11 }
 0x15e   :  { %982 = vmatmul.mubr.msk.f32.vlgmr.msra.gmra.mrb[4].mxu0 %vm305_vm2, %v291_v24 }
 0x15f   :  { %1002 = vmatprep.mubr.msk.f32.mxu0 %vm1259_vm0, %v1258_v0  ;;  %1036 = vmatpush3.bf16.msra.mxu0 %v1035_v54 }
 0x160   :  { %1037 = vmatprep.subr.bf16.mxu0 %v1260_v11 }
 0x163   :  { %1039 = vmatpush3.bf16.msra.mxu0 %v1038_v56 }
 0x229   :  { %v459_v32 = vpop.f32.mrb[2].mxu1  ;;  %v375_v33 = vpop.f32.mrb[2].mxu0 }
 0x22a   :  { %v460_v34 = vadd.f32 %v897_v30, %v459_v32  ;;  %v972_v35 = vpop.f32.mrb[3].mxu1  ;;  %v961_v36 = vpop.f32.mrb[3].mxu0  ;;  %v376_v37 = vadd.f32 %v895_v31, %v375_v33 }
 0x22c   :  { %985 = vmatpush3.xpose.msk.msra.mxu1 %vm305_vm2, %v460_v34 }
 0x22d   :  { %989 = vmatprep.subr.mxu1 %v1258_v0 }
 0x22f   :  { %987 = vmatmul.mubr.msk.f32.vlgmr.msra.gmra.mrb[4].mxu1 %vm305_vm2, %v376_v37 }
 0x230   :  { %991 = vmatprep.mubr.msk.f32.mxu1 %vm1259_vm0, %v1258_v0 }
 0x231   :  { %v540_v39 = vpop.f32.mrb[4].mxu0 }
 0x232   :  { %v541_v40 = vadd.f32 %v899_v38, %v540_v39  ;;  %v983_v41 = vpop.f32.mrb[5].mxu0 }
 0x234   :  { %990 = vmatpush3.msra.mxu1 %v541_v40 }
 0x235   :  { %1040 = vmatprep.subr.bf16.mxu1 %v1260_v11 }
 0x302   :  { %v616_v42 = vpop.f32.mrb[4].mxu1 }
 0x303   :  { %v620_v43 = vmul.f32 0.17677669, %v616_v42  ;;  %v988_v44 = vpop.f32.mrb[5].mxu1 }
 0x305   :  { %v621_v45 = vsel %vm146_vm1, %v620_v43, -inf }
 0x306   :  { %622 = vmax.xlane.f32.xlu0 %v621_v45 }
 0x393   :  { %v623_v46 = vpop.xlane.xlu0 %622 }
 0x394   :  { %v624_v47 = vsub.f32 %v620_v43, %v623_v46 }
 0x396   :  { %v625_v48 = vmul.f32 1.442695, %v624_v47 }
 0x398   :  { %1059 = vpow2.f32 %v625_v48 }
 0x3a2   :  { %v1060_v49 = vpop.eup %1059 }
 0x3a3   :  { %v627_v50 = vsel %vm146_vm1, %v1060_v49, 0.0 }
 0x3a4   :  { %628 = vadd.xlane.f32.xlu0 %v627_v50 }
 0x431   :  { %v629_v57 = vpop.xlane.xlu0 %628 }
 0x432   :  { %1061 = vrcp.f32 %v629_v57 }
 0x43c   :  { %v1062_v58 = vpop.eup %1061 }
 0x43d   :  { %v631_v59 = vmul.f32 %v1062_v58, %v1060_v49 }
 0x43f   :  { %992 = vmatmul.mubr.msk.f32.vlgmr.msra.gmra.mrb[6].mxu1 %vm146_vm1, %v631_v59 }
 0x440   :  { %1013 = vmatprep.mubr.msk.f32.mxu1 %vm1259_vm0, %v1258_v0  ;;  %1042 = vmatpush3.bf16.msra.mxu1 %v1041_v62 }
 0x441   :  { %1043 = vmatprep.subr.bf16.mxu1 %v1260_v11 }
 0x444   :  { %1045 = vmatpush3.bf16.msra.mxu1 %v1044_v4 }
 0x512   :  { %v701_v63 = vpop.f32.mrb[6].mxu1 }
 0x513   :  { %v993_v1 = vpop.f32.mrb[7].mxu1  ;;  %1003 = vmatmul.mubr.msk.f32.vlgmr.msra.gmra.mrb[6].mxu0 %vm305_vm2, %v701_v63 }
 0x5e6   :  { %v785_v6 = vpop.f32.mrb[6].mxu0 }
 0x5e7   :  { %v786_v0 = vadd.f32 %v904_v5, %v785_v6  ;;  %v1004_v7 = vpop.f32.mrb[7].mxu0 }
 0x5e9   :  { %1014 = vmatmul.mubr.msk.f32.vlgmr.msra.gmra.mrb[8].mxu1 %vm305_vm2, %v786_v0 }
 0x6bc   :  { %v869_v9 = vpop.f32.mrb[8].mxu1 }
 0x6bd   :  { %v870_v10 = vadd.f32 %v906_v8, %v869_v9  ;;  %v1015_v11 = vpop.f32.mrb[9].mxu1 }
 0x6bf   :  { %873 = vst [vmem:[#allocation14] sm:$0xff] %v870_v10 }
 0x6c0   :  { %1228 = shalt.err (!%p1225_p4)
}
 0x6c1   :  { %s1229_s29 = scalar_lea.hbm %s1547_s14, 128 }
 0x6c2   :  { %p1230_p5 = scmp.ne.s32.totalorder %s1547_s14, %s1229_s29  ;;  %p1233_p6 = scmp.lt.u32.totalorder %s1229_s29, %s1547_s14 }
 0x6c4   :  { %p1235_p7 = pnand %p1233_p6, %p1230_p5 }
 0x6c6   :  { %1238 = shalt.err (!%p1235_p7)
}
 0x6c7   :  { %883 = dma.vmem_to_hbm [thread:$0]  %s881_s0, 128, %s1547_s14, [#allocation4]  }
 0x6c8   :  { %1247 = dma.done.wait [#allocation4], 128  }
 0x6c9   :  { %1248 = vsyncadd [#allocation4], 4294967168 }
 0x6ca   :  { %887 = vsyncpa [#allocation3], 1 }
 0x6cb   :  { %888 = vsyncpa [#allocation6], 1 }
 0x6cc   :  { %889 = vsyncpa [#allocation9], 1 }
 0x6cd   :  { %890 = vsyncpa [#allocation12], 1 }
 0x6ce   :  { %891 = vsyncpa [#allocation4], 1 }

</bundles_post_ra>
